<compile_context>
chip_gen: v6e
topology: v6e:2x2x1
jax: 0.10.0
libtpu: 0.0.40
codegen_flags: <defaults>
</compile_context>

<pallas_src>
import functools

import jax
import jax.numpy as jnp
import numpy as np
from jax import lax
from jax.experimental import pallas as pl
from jax.experimental.pallas import tpu as pltpu


# ---------------------------------------------------------------------------
# Host-side (trace-time) helpers.
# ---------------------------------------------------------------------------

def _pool_bounds(in_size: int, out_size: int):
    """torch adaptive_avg_pool windows: [floor(i*in/out), ceil((i+1)*in/out))."""
    return [
        ((i * in_size) // out_size, -((-(i + 1) * in_size) // out_size))
        for i in range(out_size)
    ]


def _unit_pool_matrix(in_size: int, out_size: int) -> np.ndarray:
    """(out, in) 0/1 window-membership matrix (exact in any float dtype)."""
    p = np.zeros((out_size, in_size), dtype=np.float32)
    for i, (s, e) in enumerate(_pool_bounds(in_size, out_size)):
        p[i, s:e] = 1.0
    return p


def _round_up(x: int, m: int) -> int:
    return ((x + m - 1) // m) * m


def _padded_bytes(rows: int, cols: int, itemsize: int) -> int:
    """VMEM footprint of a 2D block after (8, 128) sublane/lane padding."""
    return _round_up(rows, 8) * _round_up(cols, 128) * itemsize


@functools.lru_cache(maxsize=1)
def _vmem_capacity_bytes() -> int:
    """Generation-aware VMEM capacity (v5e/v6e: 128 MiB, v7x: 64 MiB)."""
    try:
        cap = int(pltpu.get_tpu_info().vmem_capacity_bytes)
        if cap > 0:
            return cap
    except Exception:
        pass
    return 64 * 1024 * 1024  # conservative fallback (v7x per-core VMEM)


_TB_CANDIDATES = (4096, 2048, 1024, 512, 256, 128, 64, 32, 16, 8)
# Above this (lane-padded) size the folded kron(Ph, Pw) weight starts eating
# VMEM better spent on larger x tiles -> switch to the factored Ph/Pw path.
_FOLDED_P_MAX_BYTES = 1 * 1024 * 1024


def _choose_tb(B: int, vmem_need, budget: int) -> int:
    """Pick the batch-tile size: biggest block that fits the VMEM budget."""
    if B <= 8:
        return B
    # Keep at least two grid blocks when there is enough work, so v7x's two
    # TensorCores both stream HBM (costs one ~0.35us step on single-TC chips).
    max_tb = B if B < 512 else B // 2
    fitting = [c for c in _TB_CANDIDATES
               if c <= min(B, max_tb) and vmem_need(c) <= budget]
    if B < 512 and vmem_need(B) <= budget:
        fitting.insert(0, B)  # whole-B single step is also a candidate
    if not fitting:
        return 8
    best = fitting[0]
    # Among near-best candidates prefer one that divides B: no ragged block.
    for c in fitting:
        if 2 * c >= best and B % c == 0:
            return c
    # Ragged last block: grid = cdiv(B, tb); Pallas clips/masks it, so no
    # host-side padding (and no extra HBM pass) is ever needed.
    return best


# ---------------------------------------------------------------------------
# Kernels.
# ---------------------------------------------------------------------------

def _folded_kernel(x_ref, p_ref, s_ref, o_ref):
    # x_ref: (TB, H*W) lane-dense planes; p_ref: (H*W, oh*ow) 0/1 membership
    # matrix; s_ref: (1, oh*ow) f32 window-size reciprocals; o_ref: (TB, oh*ow)
    acc = jnp.dot(x_ref[...], p_ref[...],
                  preferred_element_type=jnp.float32,
                  precision=lax.Precision.HIGHEST)
    o_ref[...] = (acc * s_ref[...]).astype(o_ref.dtype)


def _make_factored_kernel(h_bounds, ow: int):
    """Factored path: per output row i, sum the H window then contract W."""
    def kernel(x_ref, pw_ref, o_ref):
        # x_ref: (TB, H, W); pw_ref: (W, ow) f32 with 1/nw folded in.
        pw = pw_ref[...]
        for i, (hs, he) in enumerate(h_bounds):
            win = x_ref[:, hs:he, :].astype(jnp.float32)      # (TB, nh, W)
            z = jnp.sum(win, axis=1)                          # (TB, W) f32
            out_i = jnp.dot(z, pw, preferred_element_type=jnp.float32,
                            precision=lax.Precision.HIGHEST)  # (TB, ow)
            out_i = out_i * (1.0 / (he - hs))
            o_ref[:, i * ow:(i + 1) * ow] = out_i.astype(o_ref.dtype)
    return kernel


# ---------------------------------------------------------------------------
# Public wrapper (== AvgPool.forward / forward_single).
# ---------------------------------------------------------------------------

@functools.partial(jax.jit, static_argnames=("pool_size", "single", "block_batch"))
def avg_pool(x: jax.Array, pool_size, single: bool = False, block_batch=None):
    """Pallas equivalent of SPEN AvgPool.forward / forward_single."""
    if isinstance(pool_size, int):
        oh, ow = pool_size, pool_size
    else:
        oh, ow = pool_size

    N, C, H, W = x.shape
    B, HW, OHW = N * C, H * W, oh * ow
    isz = jnp.dtype(x.dtype).itemsize

    cap = _vmem_capacity_bytes()
    budget = max(cap // 2, 16 * 1024 * 1024)
    vmem_limit = max(min((cap * 3) // 4, 96 * 1024 * 1024), 32 * 1024 * 1024)

    h_bounds = _pool_bounds(H, oh)
    w_bounds = _pool_bounds(W, ow)
    nh = np.array([e - s for s, e in h_bounds], dtype=np.float32)
    nw = np.array([e - s for s, e in w_bounds], dtype=np.float32)

    folded_p_vmem = _padded_bytes(HW, OHW, isz)
    use_folded = folded_p_vmem <= _FOLDED_P_MAX_BYTES

    if use_folded:
        def vmem_need(tb):
            return (2 * _padded_bytes(tb, HW, isz)       # x block (double-buffered)
                    + 2 * folded_p_vmem                  # P block
                    + 2 * _padded_bytes(1, OHW, 4)       # scale row
                    + 2 * _padded_bytes(tb, OHW, isz))   # out block
    else:
        def vmem_need(tb):
            x_blk = tb * _round_up(H, 8) * _round_up(W, 128) * isz
            return (2 * x_blk                            # x block (double-buffered)
                    + 2 * _padded_bytes(W, ow, 4)        # Pw^T
                    + 2 * _padded_bytes(tb, OHW, isz)    # out block
                    + 2 * _padded_bytes(tb, W, 4))       # f32 window-sum temp

    tb = block_batch if block_batch is not None else _choose_tb(B, vmem_need, budget)
    grid_b = pl.cdiv(B, tb)

    compiler_params = pltpu.CompilerParams(
        dimension_semantics=("parallel",),
        vmem_limit_bytes=vmem_limit,
    )

    if use_folded:
        ph_u = _unit_pool_matrix(H, oh)
        pw_u = _unit_pool_matrix(W, ow)
        p_unit = jnp.asarray(np.kron(ph_u, pw_u).T, dtype=x.dtype)       # (HW, OHW)
        scale = jnp.asarray(np.kron(1.0 / nh, 1.0 / nw)[None, :],
                            dtype=jnp.float32)                           # (1, OHW)
        xb = x.reshape(B, HW)  # lane-dense: last dim is H*W

        cost = pl.CostEstimate(
            flops=2 * B * HW * OHW,
            transcendentals=0,
            bytes_accessed=(B * HW + B * OHW + HW * OHW) * isz + OHW * 4,
        )

        pooled = pl.pallas_call(
            _folded_kernel,
            out_shape=jax.ShapeDtypeStruct((B, OHW), x.dtype),
            grid_spec=pltpu.PrefetchScalarGridSpec(
                num_scalar_prefetch=0,
                grid=(grid_b,),
                in_specs=[
                    pl.BlockSpec((tb, HW), lambda b: (b, 0)),
                    pl.BlockSpec((HW, OHW), lambda b: (0, 0)),
                    pl.BlockSpec((1, OHW), lambda b: (0, 0)),
                ],
                out_specs=pl.BlockSpec((tb, OHW), lambda b: (b, 0)),
            ),
            compiler_params=compiler_params,
            cost_estimate=cost,
        )(xb, p_unit, scale)
    else:
        pw_t = jnp.asarray((_unit_pool_matrix(W, ow) / nw[:, None]).T,
                           dtype=jnp.float32)                            # (W, ow)
        x3 = x.reshape(B, H, W)

        cost = pl.CostEstimate(
            flops=B * HW + 2 * B * oh * W * ow,
            transcendentals=0,
            bytes_accessed=(B * HW + B * OHW) * isz + W * ow * 4,
        )

        pooled = pl.pallas_call(
            _make_factored_kernel(tuple(h_bounds), ow),
            out_shape=jax.ShapeDtypeStruct((B, OHW), x.dtype),
            grid_spec=pltpu.PrefetchScalarGridSpec(
                num_scalar_prefetch=0,
                grid=(grid_b,),
                in_specs=[
                    pl.BlockSpec((tb, H, W), lambda b: (b, 0, 0)),
                    pl.BlockSpec((W, ow), lambda b: (0, 0)),
                ],
                out_specs=pl.BlockSpec((tb, OHW), lambda b: (b, 0)),
            ),
            compiler_params=compiler_params,
            cost_estimate=cost,
        )(x3, pw_t)

    feat = pooled.reshape(N, C, OHW)  # == F.adaptive_avg_pool2d(x, ...).flatten(2)
    if single:
        return feat
    pos_feature = feat
    ori_feature = pos_feature
    return (pos_feature, ori_feature)


# ---------------------------------------------------------------------------
# Reference + tests.
# ---------------------------------------------------------------------------

def _adaptive_avg_pool2d_ref(x: np.ndarray, pool_size) -> np.ndarray:
    """Independent numpy reference of F.adaptive_avg_pool2d(...).flatten(2)."""
    oh, ow = pool_size
    N, C, H, W = x.shape
    out = np.zeros((N, C, oh, ow), dtype=np.float64)
    for i, (hs, he) in enumerate(_pool_bounds(H, oh)):
        for j, (ws, we) in enumerate(_pool_bounds(W, ow)):
            out[:, :, i, j] = x[:, :, hs:he, ws:we].mean(axis=(2, 3))
    return out.reshape(N, C, oh * ow)


if __name__ == "__main__":
    key = jax.random.PRNGKey(0)
    k0, k1, k2, k3 = jax.random.split(key, 4)

    # Test 1: uniform windows (16x16 -> 4x4), tuple + single outputs.
    N, C, H, W = 2, 4, 16, 16
    x = jax.random.normal(k0, (N, C, H, W), dtype=jnp.float32)
    pos, ori = avg_pool(x, (4, 4))
    jax.block_until_ready((pos, ori))
    ref = _adaptive_avg_pool2d_ref(np.asarray(x, dtype=np.float64), (4, 4))
    assert pos.shape == (N, C, 16)
    np.testing.assert_allclose(np.asarray(pos), ref, rtol=1e-4, atol=1e-5)
    np.testing.assert_allclose(np.asarray(ori), ref, rtol=1e-4, atol=1e-5)
    single = jax.block_until_ready(avg_pool(x, (4, 4), single=True))
    np.testing.assert_allclose(np.asarray(single), ref, rtol=1e-4, atol=1e-5)

    # Test 2: adaptive (uneven / overlapping) windows, H,W not divisible by 4.
    x2 = jax.random.normal(k1, (2, 3, 15, 15), dtype=jnp.float32)
    out2 = jax.block_until_ready(avg_pool(x2, (4, 4), single=True))
    ref2 = _adaptive_avg_pool2d_ref(np.asarray(x2, dtype=np.float64), (4, 4))
    np.testing.assert_allclose(np.asarray(out2), ref2, rtol=1e-4, atol=1e-5)

    # Test 3: large H*W -> factored Ph/Pw path (folded kron P would be ~2 MiB).
    x3 = jax.random.normal(k2, (2, 3, 64, 64), dtype=jnp.float32)
    out3 = jax.block_until_ready(avg_pool(x3, (8, 8), single=True))
    ref3 = _adaptive_avg_pool2d_ref(np.asarray(x3, dtype=np.float64), (8, 8))
    np.testing.assert_allclose(np.asarray(out3), ref3, rtol=1e-4, atol=1e-5)

    # Test 4: ragged last grid block (B=12 planes, forced tile of 8): no host
    # padding; Pallas masks the partial block.
    x4 = jax.random.normal(k3, (3, 4, 16, 16), dtype=jnp.float32)
    out4 = jax.block_until_ready(avg_pool(x4, (4, 4), single=True, block_batch=8))
    ref4 = _adaptive_avg_pool2d_ref(np.asarray(x4, dtype=np.float64), (4, 4))
    np.testing.assert_allclose(np.asarray(out4), ref4, rtol=1e-4, atol=1e-5)

    # Test 5: bf16 input — pooling weights stay exact (0/1 matmul, f32 scale).
    x5 = x.astype(jnp.bfloat16)
    out5 = jax.block_until_ready(avg_pool(x5, (4, 4), single=True))
    ref5 = _adaptive_avg_pool2d_ref(np.asarray(x5, dtype=np.float64), (4, 4))
    np.testing.assert_allclose(np.asarray(out5, dtype=np.float64), ref5,
                               rtol=2e-2, atol=2e-2)

    print("KERNEL_OK")
</pallas_src>

<mosaic_0001>
module attributes {stable_mosaic.version = 11 : i64} {
  func.func @_folded_kernel(%arg0: i32, %arg1: memref<8x256xf32, #tpu.memory_space<vmem>>, %arg2: memref<256x16xf32, #tpu.memory_space<vmem>>, %arg3: memref<1x16xf32, #tpu.memory_space<vmem>>, %arg4: memref<8x16xf32, #tpu.memory_space<vmem>>) attributes {dimension_semantics = [#tpu.dimension_semantics<parallel>], iteration_bounds = array<i64: 1>, scalar_prefetch = 0 : i64, scratch_operands = 0 : i64, tpu.core_type = #tpu.core_type<tc>, window_params = [{transform_indices = @transform_0, window_bounds = array<i64: 8, 256>}, {pipeline_mode = #tpu.pipeline_mode<synchronous>, transform_indices = @transform_1, window_bounds = array<i64: 256, 16>}, {pipeline_mode = #tpu.pipeline_mode<synchronous>, transform_indices = @transform_2, window_bounds = array<i64: 1, 16>}, {transform_indices = @transform_3, window_bounds = array<i64: 8, 16>}]} {
    %c0 = arith.constant 0 : index
    %c0_0 = arith.constant 0 : index
    %0 = vector.load %arg1[%c0, %c0_0] : memref<8x256xf32, #tpu.memory_space<vmem>>, vector<8x256xf32>
    %c0_1 = arith.constant 0 : index
    %c0_2 = arith.constant 0 : index
    %1 = vector.load %arg2[%c0_1, %c0_2] : memref<256x16xf32, #tpu.memory_space<vmem>>, vector<256x16xf32>
    %cst = arith.constant dense<0.000000e+00> : vector<8x16xf32>
    %2 = tpu.matmul %0, %1, %cst {dimension_numbers = #tpu.dot_dimension_numbers<[1], [0], [0], [1], [0, 0, 1, 1], [], []>, precision = #tpu.contract_precision<fp32>} : vector<8x256xf32>, vector<256x16xf32>, vector<8x16xf32> -> vector<8x16xf32>
    %c0_3 = arith.constant 0 : index
    %c0_4 = arith.constant 0 : index
    %3 = vector.load %arg3[%c0_3, %c0_4] : memref<1x16xf32, #tpu.memory_space<vmem>>, vector<1x16xf32>
    %4 = vector.broadcast %3 : vector<1x16xf32> to vector<8x16xf32>
    %5 = arith.mulf %2, %4 : vector<8x16xf32>
    %c0_5 = arith.constant 0 : index
    %c0_6 = arith.constant 0 : index
    %6 = vector.load %arg4[%c0_5, %c0_6] : memref<8x16xf32, #tpu.memory_space<vmem>>, vector<8x16xf32>
    tpu.vector_store %arg4[%c0_5, %c0_6], %5 {strides = array<i32>} : memref<8x16xf32, #tpu.memory_space<vmem>>, vector<8x16xf32>,
    return
  }
  func.func @transform_0(%arg0: i32) -> (i32, i32) {
    %c0_i32 = arith.constant 0 : i32
    %c0_i32_0 = arith.constant 0 : i32
    return %arg0, %c0_i32 : i32, i32
  }
  func.func @transform_1(%arg0: i32) -> (i32, i32) {
    %c0_i32 = arith.constant 0 : i32
    %c0_i32_0 = arith.constant 0 : i32
    %c0_i32_1 = arith.constant 0 : i32
    return %c0_i32, %c0_i32_0 : i32, i32
  }
  func.func @transform_2(%arg0: i32) -> (i32, i32) {
    %c0_i32 = arith.constant 0 : i32
    %c0_i32_0 = arith.constant 0 : i32
    %c0_i32_1 = arith.constant 0 : i32
    return %c0_i32, %c0_i32_0 : i32, i32
  }
  func.func @transform_3(%arg0: i32) -> (i32, i32) {
    %c0_i32 = arith.constant 0 : i32
    %c0_i32_0 = arith.constant 0 : i32
    return %arg0, %c0_i32 : i32, i32
  }
}

</mosaic_0001>

<bundles_post_ra>
// kernel: avg_pool.1
= control target key start
LH: loop header
LB: loop body
LE: loop exit
PB: predicated region body
PF: predicated region fallthrough
CT: control target
= control target key end

     0   :  { %8 = vsyncpa [#allocation3], 0  ;;  %s1175_s12 = smov [#allocation2]   ;;  %s1815_s0 = inlined_call_operand.vmem [shape: f32[8,256], index: 0, kind: input, shape index: {}]   ;;  %s1816_s1 = inlined_call_operand.hbm [shape: f32[256,16], index: 1, kind: input, shape index: {}]   ;;  %s1817_s2 = inlined_call_operand.vmem [shape: f32[1,16], index: 2, kind: input, shape index: {}]   ;;  %s1818_s3 = inlined_call_operand.vmem [shape: f32[8,16], index: 3, kind: output, shape index: {}]  }
   0x1   :  { %s16_s13 = sshll.u32 %s1175_s12, 4  ;;  %s17_s13 = int_to_ptr.vmem [resolvable:$true] %s16_s13 }
   0x2   :  { %s1161_s14 = scalar_lea.vmem %s17_s13, 4096  ;;  %p1166_p1 = scmp.lt.s32.totalorder %s17_s13, %s17_s13 }
   0x3   :  { %p1162_p0 = scmp.ne.s32.totalorder %s17_s13, %s1161_s14  ;;  %p1167_p2 = scmp.lt.s32.totalorder %s1161_s14, %s1161_s14 }
   0x5   :  { %p1168_p3 = por %p1167_p2, %p1166_p1 }
   0x7   :  { %p1169_p4 = pnand %p1168_p3, %p1162_p0 }
   0x9   :  { %1172 = shalt.err (!%p1169_p4)
}
   0xa   :  { %s1176_s15 = smov 128   ;;  %s1177_s16 = smov 8  }
   0xb   :  { %22 = dma.hbm_to_vmem [thread:$0]  %s1816_s1, 4096, %s17_s13, [#allocation3], %s1176_s15, %s1176_s15, %s1177_s16  }
   0xc   :  { %1173 = dma.done.wait [#allocation3], 4096  }
   0xd   :  { %1174 = vsyncadd [#allocation3], 4294963200  ;;  %v61_v0 = vld [vmem:[#allocation2 + $0xf8] sm:$0xff]  ;;  %v60_v2 = vld [vmem:[#allocation2 + $0xf0] sm:$0xff]  ;;  %vm932_vm0 = vcmask 130048  }
   0xe   :  { %v45_v1 = vld [vmem:[#allocation2 + $0x78] sm:$0xff]  ;;  %v1201_v3 = vand.u32 4294901760, %v61_v0  ;;  %v1205_v5 = vand.u32 4294901760, %v60_v2  ;;  %v44_v6 = vld [vmem:[#allocation2 + $0x70] sm:$0xff]  ;;  %v59_v7 = vld [vmem:[#allocation2 + $0xe8] sm:$0xff] }
   0xf   :  { %v1203_v4 = vand.u32 4294901760, %v45_v1  ;;  %v43_v8 = vld [vmem:[#allocation2 + $0x68] sm:$0xff]  ;;  %v1207_v9 = vand.u32 4294901760, %v44_v6  ;;  %v1209_v10 = vand.u32 4294901760, %v59_v7  ;;  %v58_v12 = vld [vmem:[#allocation2 + $0xe0] sm:$0xff]  ;;  %v57_v14 = vld [vmem:[#allocation2 + $0xd8] sm:$0xff] }
  0x10   :  { %v1211_v11 = vand.u32 4294901760, %v43_v8  ;;  %v42_v13 = vld [vmem:[#allocation2 + $0x60] sm:$0xff]  ;;  %940 = vmatprep.subr.mxu0 %v1201_v3  ;;  %v1214_v15 = vand.u32 4294901760, %v58_v12  ;;  %v1218_v17 = vand.u32 4294901760, %v57_v14  ;;  %v1221_v18 = vsub.f32 %v61_v0, %v1201_v3  ;;  %v1223_v19 = vld [vmem:[#allocation2 + $0x58] sm:$0xff]  ;;  %v1225_v20 = vld [vmem:[#allocation2 + $0xd0] sm:$0xff] }
  0x11   :  { %v1216_v16 = vand.u32 4294901760, %v42_v13  ;;  %v1227_v21 = vld [vmem:[#allocation2 + $0x50] sm:$0xff]  ;;  %941 = vmatpush3.msra.mxu0 %v1203_v4  ;;  %v1231_v22 = vand.u32 4294901760, %v1223_v19  ;;  %v1234_v23 = vsub.f32 %v45_v1, %v1203_v4  ;;  %v1237_v24 = vand.u32 4294901760, %v1225_v20  ;;  %v1242_v26 = vld [vmem:[#allocation2 + $0xc8] sm:$0xff]  ;;  %v1246_v28 = vld [vmem:[#allocation2 + $0xc0] sm:$0xff] }
  0x12   :  { %v1240_v25 = vsub.f32 %v60_v2, %v1205_v5  ;;  %v1244_v27 = vld [vmem:[#allocation2 + $0x48] sm:$0xff]  ;;  %942 = vmatprep.subr.mxu0 %v1205_v5  ;;  %v1832_v29 = vand.u32 4294901760, %v1221_v18  ;;  %v1251_v30 = vand.u32 4294901760, %v1227_v21  ;;  %v1254_v31 = vsub.f32 %v44_v6, %v1207_v9  ;;  %v1268_v37 = vld [vmem:[#allocation2 + $0x40] sm:$0xff]  ;;  %v1292_v46 = vld [vmem:[#allocation2 + $0xb8] sm:$0xff] }
  0x13   :  { %v1257_v32 = vand.u32 4294901760, %v1242_v26  ;;  %943 = vmatpush3.msra.mxu0 %v1207_v9  ;;  %v1830_v33 = vand.u32 4294901760, %v1234_v23  ;;  %v1263_v35 = vsub.f32 %v59_v7, %v1209_v10  ;;  %v1266_v36 = vand.u32 4294901760, %v1244_v27  ;;  %v1302_v51 = vld [vmem:[#allocation2 + $0x38] sm:$0xff]  ;;  %v1309_v56 = vld [vmem:[#allocation2 + $0xb0] sm:$0xff]  ;;  %v1333_v2 = vld [vmem:[#allocation2 + $0xa8] sm:$0xff] }
  0x14   :  { %1887 = vst [vmem:[#allocation5_spill] sm:$0xff] %v1251_v30  ;;  %v1829_v34 = vand.u32 4294901760, %v1240_v25  ;;  %944 = vmatprep.subr.mxu0 %v1209_v10  ;;  %v290_v38 = vsub.f32 %v1221_v18, %v1832_v29  ;;  %v1827_v39 = vand.u32 4294901760, %v1254_v31  ;;  %v1276_v40 = vsub.f32 %v43_v8, %v1211_v11  ;;  %v1321_v61 = vld [vmem:[#allocation2 + $0x30] sm:$0xff] }
  0x15   :  { %1888 = vst [vmem:[#allocation6_spill] sm:$0xff] %v1257_v32  ;;  %1889 = vst [vmem:[#allocation7_spill] sm:$0xff] %v1266_v36  ;;  %v1279_v41 = vand.u32 4294901760, %v1246_v28  ;;  %945 = vmatpush3.msra.mxu0 %v1211_v11  ;;  %v178_v42 = vsub.f32 %v1234_v23, %v1830_v33  ;;  %v1825_v44 = vand.u32 4294901760, %v1263_v35  ;;  %v1290_v45 = vsub.f32 %v58_v12, %v1214_v15 }
  0x16   :  { %v297_v43 = vsub.f32 %v1240_v25, %v1829_v34  ;;  %946 = vmatprep.subr.mxu0 %v1214_v15  ;;  %v291_v47 = vand.u32 4294901760, %v290_v38  ;;  %v185_v48 = vsub.f32 %v1254_v31, %v1827_v39  ;;  %v1824_v49 = vand.u32 4294901760, %v1276_v40  ;;  %v1424_v39 = vld [vmem:[#allocation2 + $0x90] sm:$0xff] }
  0x17   :  { %1890 = vst [vmem:[#allocation8_spill] sm:$0xff] %v1279_v41  ;;  %v1300_v50 = vand.u32 4294901760, %v1268_v37  ;;  %947 = vmatpush3.msra.mxu0 %v1216_v16  ;;  %v179_v52 = vand.u32 4294901760, %v178_v42  ;;  %v304_v54 = vsub.f32 %v1263_v35, %v1825_v44  ;;  %v1822_v55 = vand.u32 4294901760, %v1290_v45  ;;  %v1434_v34 = vld [vmem:[#allocation2 + $0x10] sm:$0xff] }
  0x18   :  { %v298_v53 = vand.u32 4294901760, %v297_v43  ;;  %948 = vmatprep.subr.mxu0 %v1218_v17  ;;  %975 = vmatprep.subr.mxu1 %v291_v47  ;;  %v186_v57 = vand.u32 4294901760, %v185_v48  ;;  %v192_v58 = vsub.f32 %v1276_v40, %v1824_v49  ;;  %v1316_v59 = vsub.f32 %v42_v13, %v1216_v16  ;;  %v1344_v13 = vld [vmem:[#allocation2 + $0x28] sm:$0xff]  ;;  %v1411_v49 = vld [vmem:[#allocation2 + $0x18] sm:$0xff] }
  0x19   :  { %1891 = vst [vmem:[#allocation9_spill] sm:$0xff] %v1300_v50  ;;  %v1319_v60 = vand.u32 4294901760, %v1292_v46  ;;  %949 = vmatpush3.msra.mxu0 %v1231_v22  ;;  %976 = vmatpush3.msra.mxu1 %v179_v52  ;;  %v305_v62 = vand.u32 4294901760, %v304_v54  ;;  %v311_v63 = vsub.f32 %v1290_v45, %v1822_v55  ;;  %v1328_v0 = vsub.f32 %v57_v14, %v1218_v17 }
  0x1a   :  { %v1331_v1 = vand.u32 4294901760, %v1302_v51  ;;  %950 = vmatprep.subr.mxu0 %v1237_v24  ;;  %977 = vmatprep.subr.mxu1 %v298_v53  ;;  %v193_v6 = vand.u32 4294901760, %v192_v58  ;;  %v1820_v7 = vand.u32 4294901760, %v1316_v59  ;;  %v1339_v8 = vsub.f32 %v1223_v19, %v1231_v22 }
  0x1b   :  { %1892 = vst [vmem:[#allocation10_spill] sm:$0xff] %v1319_v60  ;;  %v1342_v12 = vand.u32 4294901760, %v1309_v56  ;;  %951 = vmatpush3.msra.mxu0 %v1251_v30  ;;  %978 = vmatpush3.msra.mxu1 %v186_v57  ;;  %v312_v14 = vand.u32 4294901760, %v311_v63  ;;  %v1819_v38 = vand.u32 4294901760, %v1328_v0  ;;  %v1350_v42 = vsub.f32 %v1225_v20, %v1237_v24  ;;  %v1367_v20 = vld [vmem:[#allocation2 + $0xa0] sm:$0xff] }
  0x1c   :  { %1893 = vst [vmem:[#allocation11_spill] sm:$0xff] %v1331_v1  ;;  %v1353_v43 = vand.u32 4294901760, %v1321_v61  ;;  %952 = vmatprep.subr.mxu0 %v1257_v32  ;;  %979 = vmatprep.subr.mxu1 %v305_v62  ;;  %v199_v19 = vsub.f32 %v1316_v59, %v1820_v7  ;;  %v1821_v47 = vand.u32 4294901760, %v1339_v8  ;;  %v1362_v48 = vsub.f32 %v1227_v21, %v1251_v30 }
  0x1d   :  { %1894 = vst [vmem:[#allocation12_spill] sm:$0xff] %v1342_v12  ;;  %v1365_v52 = vand.u32 4294901760, %v1333_v2  ;;  %953 = vmatpush3.msra.mxu0 %v1266_v36  ;;  %980 = vmatpush3.msra.mxu1 %v193_v6  ;;  %v318_v53 = vsub.f32 %v1328_v0, %v1819_v38  ;;  %v1823_v54 = vand.u32 4294901760, %v1350_v42  ;;  %v1376_v57 = vsub.f32 %v1242_v26, %v1257_v32  ;;  %v1390_v38 = vld [vmem:[#allocation2 + $0x20] sm:$0xff] }
  0x1e   :  { %1895 = vst [vmem:[#allocation13_spill] sm:$0xff] %v1353_v43  ;;  %v1379_v21 = vand.u32 4294901760, %v1344_v13  ;;  %954 = vmatprep.subr.mxu0 %v1279_v41  ;;  %981 = vmatprep.subr.mxu1 %v312_v14  ;;  %v200_v58 = vand.u32 4294901760, %v199_v19  ;;  %v206_v62 = vsub.f32 %v1339_v8, %v1821_v47  ;;  %v1826_v63 = vand.u32 4294901760, %v1362_v48  ;;  %v1400_v47 = vld [vmem:[#allocation2 + $0x98] sm:$0xff] }
  0x1f   :  { %1896 = vst [vmem:[#allocation14_spill] sm:$0xff] %v1365_v52  ;;  %v1388_v6 = vsub.f32 %v1244_v27, %v1266_v36  ;;  %955 = vmatpush3.msra.mxu0 %v1300_v50  ;;  %v319_v26 = vand.u32 4294901760, %v318_v53  ;;  %v325_v14 = vsub.f32 %v1350_v42, %v1823_v54  ;;  %v1828_v19 = vand.u32 4294901760, %v1376_v57 }
  0x20   :  { %1897 = vst [vmem:[#allocation15_spill] sm:$0xff] %v1379_v21  ;;  %v1398_v7 = vand.u32 4294901760, %v1367_v20  ;;  %982 = vmatpush3.msra.mxu1 %v200_v58  ;;  %956 = vmatprep.subr.mxu0 %v1319_v60  ;;  %v207_v27 = vand.u32 4294901760, %v206_v62  ;;  %v213_v55 = vsub.f32 %v1362_v48, %v1826_v63  ;;  %v1409_v54 = vsub.f32 %v1246_v28, %v1279_v41 }
  0x21   :  { %v1831_v53 = vand.u32 4294901760, %v1388_v6  ;;  %983 = vmatprep.subr.mxu1 %v319_v26  ;;  %957 = vmatpush3.msra.mxu0 %v1331_v1  ;;  %v326_v44 = vand.u32 4294901760, %v325_v14  ;;  %v332_v58 = vsub.f32 %v1376_v57, %v1828_v19  ;;  %v1418_v62 = vand.u32 4294901760, %v1390_v38 }
  0x22   :  { %1898 = vst [vmem:[#allocation16_spill] sm:$0xff] %v1398_v7  ;;  %v1422_v63 = vsub.f32 %v1268_v37, %v1300_v50  ;;  %984 = vmatpush3.msra.mxu1 %v207_v27  ;;  %958 = vmatprep.subr.mxu0 %v1342_v12  ;;  %v214_v28 = vand.u32 4294901760, %v213_v55  ;;  %v1835_v14 = vand.u32 4294901760, %v1409_v54  ;;  %v1432_v19 = vand.u32 4294901760, %v1400_v47 }
  0x23   :  { %1899 = vst [vmem:[#allocation17_spill] sm:$0xff] %v1418_v62  ;;  %v220_v26 = vsub.f32 %v1388_v6, %v1831_v53  ;;  %985 = vmatprep.subr.mxu1 %v326_v44  ;;  %959 = vmatpush3.msra.mxu0 %v1353_v43  ;;  %v333_v37 = vand.u32 4294901760, %v332_v58  ;;  %v1440_v55 = vsub.f32 %v1292_v46, %v1319_v60  ;;  %v1443_v33 = vand.u32 4294901760, %v1411_v49  ;;  %v1445_v53 = vld [vmem:[#allocation2 + $0x88] sm:$0xff] }
  0x24   :  { %v1838_v27 = vand.u32 4294901760, %v1422_v63  ;;  %986 = vmatpush3.msra.mxu1 %v214_v28  ;;  %960 = vmatprep.subr.mxu0 %v1365_v52  ;;  %v339_v44 = vsub.f32 %v1409_v54, %v1835_v14  ;;  %v1453_v58 = vsub.f32 %v1302_v51, %v1331_v1  ;;  %v1456_v46 = vand.u32 4294901760, %v1424_v39  ;;  %v1470_v51 = vld [vmem:[#allocation2 + $0x8] sm:$0xff] }
  0x25   :  { %1900 = vst [vmem:[#allocation18_spill] sm:$0xff] %v1443_v33  ;;  %v221_v29 = vand.u32 4294901760, %v220_v26  ;;  %987 = vmatprep.subr.mxu1 %v333_v37  ;;  %961 = vmatpush3.msra.mxu0 %v1379_v21  ;;  %v1465_v60 = vsub.f32 %v1309_v56, %v1342_v12  ;;  %v1468_v14 = vand.u32 4294901760, %v1434_v34  ;;  %v1479_v26 = vand.u32 4294901760, %v1445_v53  ;;  %v1481_v56 = vld [vmem:[#allocation2 + $0x80] sm:$0xff] }
  0x26   :  { %1901 = vst [vmem:[#allocation19_spill] sm:$0xff] %v1456_v46  ;;  %v227_v28 = vsub.f32 %v1422_v63, %v1838_v27  ;;  %962 = vmatprep.subr.mxu0 %v1398_v7  ;;  %v340_v37 = vand.u32 4294901760, %v339_v44  ;;  %v1476_v27 = vsub.f32 %v1321_v61, %v1353_v43  ;;  %v1905_v50 = vand.u32 4294901760, %v1440_v55  ;;  %v1504_v44 = vld [vmem:[#allocation2] sm:$0xff] }
  0x27   :  { %1902 = vst [vmem:[#allocation20_spill] sm:$0xff] %v1468_v14  ;;  %988 = vmatpush3.msra.mxu1 %v221_v29  ;;  %1904 = vst [vmem:[#allocation22_spill] sm:$0xff] %v1479_v26  ;;  %963 = vmatpush3.msra.mxu0 %v1418_v62  ;;  %v1490_v1 = vsub.f32 %v1333_v2, %v1365_v52  ;;  %v1907_v61 = vand.u32 4294901760, %v1453_v58  ;;  %v1512_v41 = vand.u32 4294901760, %v1481_v56 }
  0x28   :  { %1903 = vst [vmem:[#allocation21_spill] sm:$0xff] %v1476_v27  ;;  %v228_v12 = vand.u32 4294901760, %v227_v28  ;;  %v346_v29 = vsub.f32 %v1440_v55, %v1905_v50  ;;  %989 = vmatprep.subr.mxu1 %v340_v37  ;;  %964 = vmatprep.subr.mxu0 %v1432_v19  ;;  %v1498_v28 = vand.u32 4294901760, %v1470_v51  ;;  %v1502_v50 = vsub.f32 %v1344_v13, %v1379_v21  ;;  %v29_v13 = vld [vmem:[%s1815_s0 + $0x8] sm:$0xff] }
  0x29   :  { %1906 = vst [vmem:[#allocation23_spill] sm:$0xff] %v1490_v1  ;;  %v234_v43 = vsub.f32 %v1453_v58, %v1907_v61  ;;  %965 = vmatpush3.msra.mxu0 %v1443_v33  ;;  %v1908_v37 = vand.u32 4294901760, %v1465_v60  ;;  %v28_v61 = vld [vmem:[%s1815_s0] sm:$0xff]  ;;  %v1538_v36 = vsub.f32 %v1390_v38, %v1418_v62  ;;  %v1551_v38 = vsub.f32 %v1400_v47, %v1432_v19 }
  0x2a   :  { %990 = vmatpush3.msra.mxu1 %v228_v12  ;;  %v347_v2 = vand.u32 4294901760, %v346_v29  ;;  %966 = vmatprep.subr.mxu0 %v1456_v46  ;;  %v1909_v12 = vand.u32 4294901760, %v1476_v27 }
  0x2b   :  { %v353_v52 = vsub.f32 %v1465_v60, %v1908_v37  ;;  %v235_v21 = vand.u32 4294901760, %v234_v43  ;;  %v1524_v37 = vsub.f32 %v1367_v20, %v1398_v7  ;;  %967 = vmatpush3.msra.mxu0 %v1468_v14  ;;  %v1910_v43 = vand.u32 4294901760, %v1490_v1 }
  0x2c   :  { %v241_v29 = vsub.f32 %v1476_v27, %v1909_v12  ;;  %991 = vmatprep.subr.mxu1 %v347_v2  ;;  %v1534_v12 = vand.u32 4294901760, %v1504_v44  ;;  %968 = vmatprep.subr.mxu0 %v1479_v26  ;;  %v1911_v2 = vand.u32 4294901760, %v1502_v50  ;;  %v1545_v27 = vand.u32 4294901760, %v29_v13 }
  0x2d   :  { %v354_v32 = vand.u32 4294901760, %v353_v52  ;;  %v360_v30 = vsub.f32 %v1490_v1, %v1910_v43  ;;  %992 = vmatpush3.msra.mxu1 %v235_v21  ;;  %v1863_v7 = vand.u32 4294901760, %v1524_v37  ;;  %969 = vmatpush3.msra.mxu0 %v1498_v28  ;;  %v1864_v1 = vand.u32 4294901760, %v1538_v36 }
  0x2e   :  { %v242_v20 = vand.u32 4294901760, %v241_v29  ;;  %v248_v52 = vsub.f32 %v1502_v50, %v1911_v2  ;;  %1912 = vst [vmem:[#allocation24_spill] sm:$0xff] %v1545_v27  ;;  %v1553_v21 = vand.u32 4294901760, %v28_v61  ;;  %970 = vmatprep.subr.mxu0 %v1512_v41  ;;  %399 = vmatprep.mubr.f32.mxu1 %v1545_v27 }
  0x2f   :  { %993 = vmatprep.subr.mxu1 %v354_v32  ;;  %v361_v43 = vand.u32 4294901760, %v360_v30  ;;  %v367_v2 = vsub.f32 %v1524_v37, %v1863_v7  ;;  %v1560_v30 = vsub.f32 %v29_v13, %v1545_v27  ;;  %v1564_v32 = vsub.f32 %v1411_v49, %v1443_v33  ;;  %971 = vmatpush3.msra.mxu0 %v1534_v12 }
  0x30   :  { %1913 = vst [vmem:[#allocation25_spill] sm:$0xff] %v1553_v21  ;;  %994 = vmatpush3.msra.mxu1 %v242_v20  ;;  %v249_v29 = vand.u32 4294901760, %v248_v52  ;;  %v255_v47 = vsub.f32 %v1538_v36, %v1864_v1  ;;  %v1572_v52 = vsub.f32 %v28_v61, %v1553_v21  ;;  %v1576_v13 = vsub.f32 %v1424_v39, %v1456_v46 }
  0x31   :  { %995 = vmatprep.subr.mxu1 %v361_v43  ;;  %v368_v7 = vand.u32 4294901760, %v367_v2  ;;  %v1869_v49 = vand.u32 4294901760, %v1560_v30  ;;  %1010 = vmatprep.subr.mxu0 %v1221_v18  ;;  %v1872_v43 = vand.u32 4294901760, %v1564_v32  ;;  %v1583_v1 = vsub.f32 %v1434_v34, %v1468_v14 }
  0x32   :  { %996 = vmatpush3.msra.mxu1 %v249_v29  ;;  %v256_v20 = vand.u32 4294901760, %v255_v47  ;;  %v1914_v61 = vand.u32 4294901760, %v1551_v38  ;;  %v1915_v29 = vand.u32 4294901760, %v1572_v52  ;;  %v1916_v27 = vand.u32 4294901760, %v1576_v13 }
  0x33   :  { %997 = vmatprep.subr.mxu1 %v368_v7  ;;  %v161_v2 = vsub.f32 %v1560_v30, %v1869_v49  ;;  %v262_v34 = vsub.f32 %v1564_v32, %v1872_v43  ;;  %v1610_v14 = vsub.f32 %v1470_v51, %v1498_v28  ;;  %v1918_v46 = vand.u32 4294901760, %v1583_v1 }
  0x34   :  { %v374_v33 = vsub.f32 %v1551_v38, %v1914_v61  ;;  %v1600_v61 = vsub.f32 %v1445_v53, %v1479_v26  ;;  %998 = vmatpush3.msra.mxu1 %v256_v20  ;;  %v167_v7 = vsub.f32 %v1572_v52, %v1915_v29  ;;  %v381_v49 = vsub.f32 %v1576_v13, %v1916_v27 }
  0x35   :  { %1917 = vst [vmem:[#allocation26_spill] sm:$0xff] %v1610_v14  ;;  %v162_v43 = vand.u32 4294901760, %v161_v2  ;;  %v263_v47 = vand.u32 4294901760, %v262_v34  ;;  %v269_v53 = vsub.f32 %v1583_v1, %v1918_v46  ;;  %v1879_v29 = vand.u32 4294901760, %v1610_v14 }
  0x36   :  { %v375_v39 = vand.u32 4294901760, %v374_v33  ;;  %v1880_v33 = vand.u32 4294901760, %v1600_v61  ;;  %v168_v20 = vand.u32 4294901760, %v167_v7  ;;  %v382_v26 = vand.u32 4294901760, %v381_v49 }
  0x37   :  { %v1619_v27 = vsub.f32 %v1481_v56, %v1512_v41  ;;  %163 = vmatprep.mubr.f32.mxu0 %v162_v43  ;;  %v270_v51 = vand.u32 4294901760, %v269_v53  ;;  %v1626_v46 = vsub.f32 %v1504_v44, %v1534_v12  ;;  %v276_v49 = vsub.f32 %v1610_v14, %v1879_v29  ;;  %v1921_v53 = vld [vmem:[#allocation21_spill] sm:$0xff]  ;;  %v1934_v29 = vld [vmem:[#allocation16_spill] sm:$0xff] }
  0x38   :  { %999 = vmatprep.subr.mxu1 %v375_v39  ;;  %v388_v2 = vsub.f32 %v1600_v61, %v1880_v33  ;;  %169 = vmatmul.mubr.f32.vlgmr.msra.gmra.mxu0 %v168_v20  ;;  %v1922_v20 = vld [vmem:[#allocation5_spill] sm:$0xff]  ;;  %v1935_v33 = vand.u32 4294901760, %v1221_v18  ;;  %v1943_v18 = vand.u32 4294901760, %v1263_v35 }
  0x39   :  { %1919 = vst [vmem:[#allocation27_spill] sm:$0xff] %v1619_v27  ;;  %1000 = vmatpush3.msra.mxu1 %v263_v47  ;;  %1920 = vst [vmem:[#allocation28_spill] sm:$0xff] %v1626_v46  ;;  %v1878_v56 = vand.u32 4294901760, %v1619_v27  ;;  %1011 = vmatpush3.msra.mxu0 %v1234_v23  ;;  %v1877_v39 = vand.u32 4294901760, %v1626_v46  ;;  %v277_v34 = vand.u32 4294901760, %v276_v49  ;;  %v1925_v49 = vld [vmem:[#allocation7_spill] sm:$0xff] }
  0x3a   :  { %1001 = vmatprep.subr.mxu1 %v382_v26  ;;  %v389_v43 = vand.u32 4294901760, %v388_v2  ;;  %1012 = vmatprep.subr.mxu0 %v1240_v25  ;;  %v1924_v2 = vld [vmem:[#allocation6_spill] sm:$0xff] }
  0x3b   :  { %1002 = vmatpush3.msra.mxu1 %v270_v51  ;;  %v395_v44 = vsub.f32 %v1619_v27, %v1878_v56  ;;  %536 = vmatprep.mubr.f32.mxu0 %v1560_v30  ;;  %v283_v26 = vsub.f32 %v1626_v46, %v1877_v39  ;;  %v1923_v51 = vld [vmem:[#allocation23_spill] sm:$0xff]  ;;  %v1932_v39 = vld [vmem:[#allocation14_spill] sm:$0xff] }
  0x3c   :  { %1013 = vmatpush3.msra.mxu0 %v1254_v31  ;;  %1003 = vmatprep.subr.mxu1 %v389_v43  ;;  %v1926_v43 = vld [vmem:[#allocation8_spill] sm:$0xff]  ;;  %v1933_v56 = vld [vmem:[#allocation15_spill] sm:$0xff] }
  0x3d   :  { %1014 = vmatprep.subr.mxu0 %v1263_v35  ;;  %1004 = vmatpush3.msra.mxu1 %v277_v34  ;;  %v396_v47 = vand.u32 4294901760, %v395_v44  ;;  %v284_v7 = vand.u32 4294901760, %v283_v26  ;;  %v1927_v34 = vld [vmem:[#allocation9_spill] sm:$0xff]  ;;  %v1928_v44 = vld [vmem:[#allocation10_spill] sm:$0xff]  ;;  %v1929_v26 = vld [vmem:[#allocation11_spill] sm:$0xff]  ;;  %v1948_v35 = vand.u32 4294901760, %v1572_v52 }
  0x3e   :  { %1015 = vmatpush3.msra.mxu0 %v1276_v40 }
  0x3f   :  { %1005 = vmatprep.subr.mxu1 %v396_v47  ;;  %1016 = vmatprep.subr.mxu0 %v1290_v45  ;;  %v1930_v47 = vld [vmem:[#allocation12_spill] sm:$0xff] }
  0x40   :  { %1006 = vmatpush3.msra.mxu1 %v284_v7  ;;  %1017 = vmatpush3.msra.mxu0 %v1316_v59  ;;  %v1931_v7 = vld [vmem:[#allocation13_spill] sm:$0xff] }
  0x41   :  { %401 = vmatmul.mubr.f32.vlgmr.msra.gmra.mxu1 %v1553_v21  ;;  %1018 = vmatprep.subr.mxu0 %v1328_v0  ;;  %v1936_v21 = vld [vmem:[#allocation18_spill] sm:$0xff] }
  0x42   :  { %1045 = vmatprep.subr.mxu1 %v1201_v3  ;;  %1019 = vmatpush3.msra.mxu0 %v1339_v8 }
  0x43   :  { %1046 = vmatpush3.msra.mxu1 %v1203_v4  ;;  %1020 = vmatprep.subr.mxu0 %v1350_v42 }
  0x44   :  { %1047 = vmatprep.subr.mxu1 %v1205_v5  ;;  %1021 = vmatpush3.msra.mxu0 %v1362_v48 }
  0x45   :  { %1048 = vmatpush3.msra.mxu1 %v1207_v9  ;;  %1022 = vmatprep.subr.mxu0 %v1376_v57 }
  0x46   :  { %1049 = vmatprep.subr.mxu1 %v1209_v10  ;;  %1023 = vmatpush3.msra.mxu0 %v1388_v6 }
  0x47   :  { %1050 = vmatpush3.msra.mxu1 %v1211_v11  ;;  %1024 = vmatprep.subr.mxu0 %v1409_v54 }
  0x48   :  { %1051 = vmatprep.subr.mxu1 %v1214_v15  ;;  %1025 = vmatpush3.msra.mxu0 %v1422_v63 }
  0x49   :  { %1052 = vmatpush3.msra.mxu1 %v1216_v16  ;;  %1026 = vmatprep.subr.mxu0 %v1440_v55 }
  0x4a   :  { %1053 = vmatprep.subr.mxu1 %v1218_v17  ;;  %1027 = vmatpush3.msra.mxu0 %v1453_v58 }
  0x4b   :  { %1054 = vmatpush3.msra.mxu1 %v1231_v22  ;;  %1028 = vmatprep.subr.mxu0 %v1465_v60 }
  0x4c   :  { %1055 = vmatprep.subr.mxu1 %v1237_v24  ;;  %1029 = vmatpush3.msra.mxu0 %v1921_v53 }
  0x4d   :  { %1056 = vmatpush3.msra.mxu1 %v1922_v20  ;;  %1030 = vmatprep.subr.mxu0 %v1923_v51 }
  0x4e   :  { %1057 = vmatprep.subr.mxu1 %v1924_v2  ;;  %1031 = vmatpush3.msra.mxu0 %v1502_v50 }
  0x4f   :  { %1058 = vmatpush3.msra.mxu1 %v1925_v49  ;;  %1032 = vmatprep.subr.mxu0 %v1524_v37 }
  0x50   :  { %1059 = vmatprep.subr.mxu1 %v1926_v43  ;;  %1033 = vmatpush3.msra.mxu0 %v1538_v36 }
  0x51   :  { %1060 = vmatpush3.msra.mxu1 %v1927_v34  ;;  %1034 = vmatprep.subr.mxu0 %v1551_v38 }
  0x52   :  { %1061 = vmatprep.subr.mxu1 %v1928_v44  ;;  %1035 = vmatpush3.msra.mxu0 %v1564_v32 }
  0x53   :  { %1062 = vmatpush3.msra.mxu1 %v1929_v26  ;;  %1036 = vmatprep.subr.mxu0 %v1576_v13 }
  0x54   :  { %1063 = vmatprep.subr.mxu1 %v1930_v47  ;;  %1037 = vmatpush3.msra.mxu0 %v1583_v1 }
  0x55   :  { %1064 = vmatpush3.msra.mxu1 %v1931_v7  ;;  %1038 = vmatprep.subr.mxu0 %v1600_v61 }
  0x56   :  { %1065 = vmatprep.subr.mxu1 %v1932_v39  ;;  %1039 = vmatpush3.msra.mxu0 %v1610_v14  ;;  %v1937_v14 = vand.u32 4294901760, %v1234_v23  ;;  %v1944_v23 = vand.u32 4294901760, %v1276_v40  ;;  %v1950_v40 = vand.u32 4294901760, %v1339_v8  ;;  %v1966_v8 = vand.u32 4294901760, %v1564_v32 }
  0x57   :  { %1066 = vmatpush3.msra.mxu1 %v1933_v56  ;;  %1040 = vmatprep.subr.mxu0 %v1619_v27  ;;  %v1938_v56 = vld [vmem:[#allocation19_spill] sm:$0xff]  ;;  %v1942_v27 = vld [vmem:[#allocation22_spill] sm:$0xff] }
  0x58   :  { %1067 = vmatprep.subr.mxu1 %v1934_v29  ;;  %1041 = vmatpush3.msra.mxu0 %v1626_v46  ;;  %v1939_v29 = vand.u32 4294901760, %v1240_v25  ;;  %v1940_v46 = vld [vmem:[#allocation20_spill] sm:$0xff]  ;;  %v1945_v25 = vand.u32 4294901760, %v1290_v45  ;;  %v1951_v45 = vand.u32 4294901760, %v1350_v42  ;;  %v1967_v42 = vand.u32 4294901760, %v1576_v13 }
  0x59   :  { %1068 = vmatpush3.msra.mxu1 %v1418_v62  ;;  %539 = vmatmul.mubr.f32.vlgmr.msra.gmra.mxu0 %v1572_v52  ;;  %v1941_v62 = vand.u32 4294901760, %v1254_v31  ;;  %v1946_v31 = vand.u32 4294901760, %v1560_v30  ;;  %v1980_v30 = vld [vmem:[#allocation25_spill] sm:$0xff] }
  0x5a   :  { %1069 = vmatprep.subr.mxu1 %v1432_v19  ;;  %1080 = vmatprep.subr.mxu0 %v1935_v33 }
  0x5b   :  { %1070 = vmatpush3.msra.mxu1 %v1936_v21  ;;  %1081 = vmatpush3.msra.mxu0 %v1937_v14  ;;  %v1949_v14 = vand.u32 4294901760, %v1328_v0  ;;  %v1953_v0 = vand.u32 4294901760, %v1376_v57 }
  0x5c   :  { %1071 = vmatprep.subr.mxu1 %v1938_v56  ;;  %1082 = vmatprep.subr.mxu0 %v1939_v29 }
  0x5d   :  { %1072 = vmatpush3.msra.mxu1 %v1940_v46  ;;  %1083 = vmatpush3.msra.mxu0 %v1941_v62  ;;  %v1947_v62 = vand.u32 4294901760, %v1316_v59  ;;  %v1952_v59 = vand.u32 4294901760, %v1362_v48  ;;  %v1969_v48 = vand.u32 4294901760, %v1600_v61 }
  0x5e   :  { %1073 = vmatprep.subr.mxu1 %v1942_v27  ;;  %1084 = vmatprep.subr.mxu0 %v1943_v18 }
  0x5f   :  { %1074 = vmatpush3.msra.mxu1 %v1498_v28  ;;  %1085 = vmatpush3.msra.mxu0 %v1944_v23 }
  0x60   :  { %1075 = vmatprep.subr.mxu1 %v1512_v41  ;;  %1086 = vmatprep.subr.mxu0 %v1945_v25 }
  0x61   :  { %1076 = vmatpush3.msra.mxu1 %v1534_v12  ;;  %643 = vmatprep.mubr.f32.mxu1 %v1946_v31 }
  0x62   :  { %1087 = vmatpush3.msra.mxu0 %v1947_v62  ;;  %647 = vmatmul.mubr.f32.vlgmr.msra.gmra.mxu1 %v1948_v35 }
  0x63   :  { %1088 = vmatprep.subr.mxu0 %v1949_v14  ;;  %1115 = vmatprep.subr.mxu1 %v1201_v3  ;;  %v1954_v3 = vand.u32 4294901760, %v1388_v6  ;;  %v1973_v6 = vld [vmem:[#allocation27_spill] sm:$0xff] }
  0x64   :  { %1089 = vmatpush3.msra.mxu0 %v1950_v40  ;;  %1116 = vmatpush3.msra.mxu1 %v1203_v4  ;;  %v1955_v4 = vand.u32 4294901760, %v1409_v54  ;;  %v1970_v54 = vld [vmem:[#allocation26_spill] sm:$0xff] }
  0x65   :  { %1090 = vmatprep.subr.mxu0 %v1951_v45  ;;  %1117 = vmatprep.subr.mxu1 %v1205_v5  ;;  %v1956_v5 = vand.u32 4294901760, %v1422_v63  ;;  %v1971_v57 = vand.u32 4294901760, %v1970_v54  ;;  %v1972_v63 = vld [vmem:[#allocation15_spill] sm:$0xff] }
  0x66   :  { %1091 = vmatpush3.msra.mxu0 %v1952_v59  ;;  %1118 = vmatpush3.msra.mxu1 %v1207_v9  ;;  %v1957_v9 = vand.u32 4294901760, %v1440_v55  ;;  %v1974_v55 = vand.u32 4294901760, %v1973_v6 }
  0x67   :  { %1092 = vmatprep.subr.mxu0 %v1953_v0  ;;  %1119 = vmatprep.subr.mxu1 %v1209_v10  ;;  %v1958_v10 = vand.u32 4294901760, %v1453_v58  ;;  %v1975_v58 = vld [vmem:[#allocation16_spill] sm:$0xff] }
  0x68   :  { %1093 = vmatpush3.msra.mxu0 %v1954_v3  ;;  %1120 = vmatpush3.msra.mxu1 %v1211_v11  ;;  %v1959_v11 = vand.u32 4294901760, %v1465_v60  ;;  %v1965_v60 = vand.u32 4294901760, %v1551_v38  ;;  %v1979_v38 = vld [vmem:[#allocation17_spill] sm:$0xff] }
  0x69   :  { %1094 = vmatprep.subr.mxu0 %v1955_v4  ;;  %1121 = vmatprep.subr.mxu1 %v1214_v15  ;;  %v1960_v15 = vand.u32 4294901760, %v1921_v53 }
  0x6a   :  { %1095 = vmatpush3.msra.mxu0 %v1956_v5  ;;  %1122 = vmatpush3.msra.mxu1 %v1216_v16  ;;  %v1961_v16 = vand.u32 4294901760, %v1923_v51 }
  0x6b   :  { %1096 = vmatprep.subr.mxu0 %v1957_v9  ;;  %1123 = vmatprep.subr.mxu1 %v1218_v17  ;;  %v1962_v17 = vand.u32 4294901760, %v1502_v50  ;;  %v1976_v50 = vld [vmem:[#allocation28_spill] sm:$0xff] }
  0x6c   :  { %1097 = vmatpush3.msra.mxu0 %v1958_v10  ;;  %1124 = vmatpush3.msra.mxu1 %v1231_v22  ;;  %v1963_v22 = vand.u32 4294901760, %v1524_v37  ;;  %v1978_v37 = vld [vmem:[#allocation24_spill] sm:$0xff] }
  0x6d   :  { %1098 = vmatprep.subr.mxu0 %v1959_v11  ;;  %1125 = vmatprep.subr.mxu1 %v1237_v24  ;;  %v1964_v24 = vand.u32 4294901760, %v1538_v36  ;;  %v1968_v36 = vand.u32 4294901760, %v1583_v1  ;;  %v1977_v1 = vand.u32 4294901760, %v1976_v50 }
  0x6e   :  { %1099 = vmatpush3.msra.mxu0 %v1960_v15  ;;  %1126 = vmatpush3.msra.mxu1 %v1922_v20 }
  0x6f   :  { %1100 = vmatprep.subr.mxu0 %v1961_v16  ;;  %1127 = vmatprep.subr.mxu1 %v1924_v2 }
  0x70   :  { %1101 = vmatpush3.msra.mxu0 %v1962_v17  ;;  %1128 = vmatpush3.msra.mxu1 %v1925_v49 }
  0x71   :  { %1102 = vmatprep.subr.mxu0 %v1963_v22  ;;  %1129 = vmatprep.subr.mxu1 %v1926_v43 }
  0x72   :  { %1103 = vmatpush3.msra.mxu0 %v1964_v24  ;;  %1130 = vmatpush3.msra.mxu1 %v1927_v34 }
  0x73   :  { %1104 = vmatprep.subr.mxu0 %v1965_v60  ;;  %1131 = vmatprep.subr.mxu1 %v1928_v44  ;;  %v939_v44 = vld [vmem:[%s1817_s2] ss:$0 sm:$0xff] }
  0x74   :  { %1105 = vmatpush3.msra.mxu0 %v1966_v8  ;;  %1132 = vmatpush3.msra.mxu1 %v1929_v26 }
  0x75   :  { %1106 = vmatprep.subr.mxu0 %v1967_v42  ;;  %1133 = vmatprep.subr.mxu1 %v1930_v47 }
  0x76   :  { %1107 = vmatpush3.msra.mxu0 %v1968_v36  ;;  %1134 = vmatpush3.msra.mxu1 %v1931_v7 }
  0x77   :  { %1108 = vmatprep.subr.mxu0 %v1969_v48  ;;  %1135 = vmatprep.subr.mxu1 %v1932_v39 }
  0x78   :  { %1109 = vmatpush3.msra.mxu0 %v1971_v57  ;;  %1136 = vmatpush3.msra.mxu1 %v1972_v63 }
  0x79   :  { %1110 = vmatprep.subr.mxu0 %v1974_v55  ;;  %1137 = vmatprep.subr.mxu1 %v1975_v58 }
  0x7a   :  { %1111 = vmatpush3.msra.mxu0 %v1977_v1  ;;  %813 = vmatprep.mubr.f32.mxu0 %v1978_v37 }
  0x7b   :  { %1138 = vmatpush3.msra.mxu1 %v1979_v38  ;;  %815 = vmatmul.mubr.f32.vlgmr.msra.gmra.mxu0 %v1980_v30 }
  0x7c   :  { %1139 = vmatprep.subr.mxu1 %v1432_v19  ;;  %917 = vmatprep.mubr.f32.mxu1 %v1978_v37 }
  0x7d   :  { %1140 = vmatpush3.msra.mxu1 %v1936_v21 }
  0x7e   :  { %1141 = vmatprep.subr.mxu1 %v1938_v56 }
  0x7f   :  { %1142 = vmatpush3.msra.mxu1 %v1940_v46 }
  0x80   :  { %1143 = vmatprep.subr.mxu1 %v1942_v27 }
  0x81   :  { %1144 = vmatpush3.msra.mxu1 %v1498_v28 }
  0x82   :  { %1145 = vmatprep.subr.mxu1 %v1512_v41 }
  0x83   :  { %1146 = vmatpush3.msra.mxu1 %v1534_v12 }
  0x84   :  { %919 = vmatmul.mubr.f32.vlgmr.msra.gmra.mxu1 %v1980_v30 }
  0xf8   :  { %v972_v32 = vpop.f32.mrf.mxu0 }
  0xfa   :  { %v973_v19 = vpop.f32.mrf.mxu0 }
  0xfb   :  { %v974_v39 = vadd.f32 %v973_v19, %v972_v32 }
 0x101   :  { %v1007_v52 = vpop.f32.mrf.mxu1 }
 0x103   :  { %v1008_v61 = vpop.f32.mrf.mxu1 }
 0x104   :  { %v1009_v56 = vadd.f32 %v1008_v61, %v1007_v52 }
 0x106   :  { %v403_v28 = vadd.f32 %v1009_v56, %v974_v39 }
 0x119   :  { %v1042_v13 = vpop.f32.mrf.mxu0 }
 0x11b   :  { %v1043_v21 = vpop.f32.mrf.mxu0 }
 0x11c   :  { %v1044_v27 = vadd.f32 %v1043_v21, %v1042_v13 }
 0x11e   :  { %v541_v41 = vadd.f32 %v1044_v27, %v403_v28 }
 0x122   :  { %v1077_v33 = vpop.f32.mrf.mxu1 }
 0x124   :  { %v1078_v46 = vpop.f32.mrf.mxu1 }
 0x125   :  { %v1079_v20 = vadd.f32 %v1078_v46, %v1077_v33 }
 0x127   :  { %v649_v2 = vadd.f32 %v1079_v20, %v541_v41 }
 0x13b   :  { %v1112_v29 = vpop.f32.mrf.mxu0 }
 0x13d   :  { %v1113_v53 = vpop.f32.mrf.mxu0 }
 0x13e   :  { %v1114_v51 = vadd.f32 %v1113_v53, %v1112_v29 }
 0x140   :  { %v817_v43 = vadd.f32 %v1114_v51, %v649_v2 }
 0x144   :  { %v1147_v12 = vpop.f32.mrf.mxu1 }
 0x146   :  { %v1148_v49 = vpop.f32.mrf.mxu1 }
 0x147   :  { %v1149_v34 = vadd.f32 %v1148_v49, %v1147_v12 }
 0x149   :  { %v921_v26 = vadd.f32 %v1149_v34, %v817_v43 }
 0x14b   :  { %v931_v47 = vmul.f32 %v939_v44, %v921_v26 }
 0x14d   :  { %933 = vst.msk [vmem:[%s1818_s3] sm:$0xff] %vm932_vm0, %v931_v47 }
 0x14e   :  { %938 = vsyncpa [#allocation3], 1 }

</bundles_post_ra>
